<compile_context>
chip_gen: v7x
topology: tpu7x:2x2x1
jax: 0.10.0
libtpu: 0.0.40
codegen_flags: <defaults>
</compile_context>

<pallas_src>
import functools

import jax
import jax.numpy as jnp
from jax.experimental import pallas as pl
from jax.experimental.pallas import tpu as pltpu


def _round_up(n, m):
    return ((n + m - 1) // m) * m


def mlp_kernel(x_ref, w1_ref, w2_ref, w3_ref, b_ref, o_ref, *, h1, h2, h3):
    # One grid step = one batch tile. All three linear layers + ReLUs fused.
    x = x_ref[...]
    b_all = b_ref[...]                       # (1, h1+h2+h3) packed biases (f32)
    b1 = b_all[:, 0:h1]
    b2 = b_all[:, h1:h1 + h2]
    b3 = b_all[:, h1 + h2:h1 + h2 + h3]

    h = jnp.dot(x, w1_ref[...], preferred_element_type=jnp.float32) + b1
    h = jnp.maximum(h, 0.0)
    h = jnp.dot(h, w2_ref[...], preferred_element_type=jnp.float32) + b2
    h = jnp.maximum(h, 0.0)
    h = jnp.dot(h, w3_ref[...], preferred_element_type=jnp.float32) + b3
    h = jnp.maximum(h, 0.0)
    o_ref[...] = h.astype(o_ref.dtype)


def net_forward(x, params, *, block_m=None, bf16_fc1=False):
    """x: (B, n_features) f32. params: dict of transposed weights / biases.

    block_m: batch tile (rows per grid step). Defaults to min(1024, B rounded
             up to 8): big enough to hit the HBM roofline, small enough that
             double-buffered tiles stay well under the scoped VMEM limit on
             every TPU generation (incl. v7x's 64 MiB), and yields a multi-step
             "parallel" grid for pipelining / megacore sharding on large B.
    bf16_fc1: cast x and w1 to bf16 for the fc1 matmul (halves x read traffic);
              the dot still accumulates in f32 and bias+ReLU stay f32.
    """
    B, F = x.shape
    w1, b1 = params["w1"], params["b1"]   # (F, 8), (1, 8)
    w2, b2 = params["w2"], params["b2"]   # (8, 5), (1, 5)
    w3, b3 = params["w3"], params["b3"]   # (5, 5), (1, 5)
    H1, H2, H3 = w1.shape[1], w2.shape[1], w3.shape[1]

    if block_m is None:
        block_m = min(1024, _round_up(B, 8))
    block_m = _round_up(block_m, 8)

    grid_m = pl.cdiv(B, block_m)
    b_pad = grid_m * block_m

    x_in = x
    if bf16_fc1:
        x_in = x_in.astype(jnp.bfloat16)
        w1 = w1.astype(jnp.bfloat16)
    if b_pad != B:
        # Pad batch up to a multiple of block_m; padded rows computed then dropped.
        x_in = jnp.pad(x_in, ((0, b_pad - B), (0, 0)))

    # Pack the three tiny biases into one array -> one VMEM tile / DMA per step.
    b_packed = jnp.concatenate([b1, b2, b3], axis=1)   # (1, H1+H2+H3), f32

    kernel = functools.partial(mlp_kernel, h1=H1, h2=H2, h3=H3)

    out = pl.pallas_call(
        kernel,
        out_shape=jax.ShapeDtypeStruct((b_pad, H3), jnp.float32),
        grid=(grid_m,),
        in_specs=[
            pl.BlockSpec((block_m, F), lambda i: (i, 0)),          # x tile
            pl.BlockSpec((F, H1), lambda i: (0, 0)),               # w1 (whole)
            pl.BlockSpec((H1, H2), lambda i: (0, 0)),              # w2 (whole)
            pl.BlockSpec((H2, H3), lambda i: (0, 0)),              # w3 (whole)
            pl.BlockSpec((1, H1 + H2 + H3), lambda i: (0, 0)),     # packed biases
        ],
        out_specs=pl.BlockSpec((block_m, H3), lambda i: (i, 0)),
        compiler_params=pltpu.CompilerParams(
            dimension_semantics=("parallel",),
            vmem_limit_bytes=32 * 1024 * 1024,
        ),
    )(x_in, w1, w2, w3, b_packed)

    if b_pad != B:
        out = out[:B]
    return out


def init_params(key, n_features):
    """Deterministic init matching torch.nn.Linear's U(-1/sqrt(fan_in), 1/sqrt(fan_in))."""
    def linear(key, fan_in, fan_out):
        kw, kb = jax.random.split(key)
        bound = 1.0 / jnp.sqrt(jnp.float32(fan_in))
        # Stored as (in, out) == torch weight (out, in) transposed.
        w = jax.random.uniform(kw, (fan_in, fan_out), jnp.float32, -bound, bound)
        b = jax.random.uniform(kb, (1, fan_out), jnp.float32, -bound, bound)
        return w, b

    k1, k2, k3 = jax.random.split(key, 3)
    w1, b1 = linear(k1, n_features, 8)
    w2, b2 = linear(k2, 8, 5)
    w3, b3 = linear(k3, 5, 5)
    return {"w1": w1, "b1": b1, "w2": w2, "b2": b2, "w3": w3, "b3": b3}


def net_forward_ref(x, params):
    """Pure-JAX reference for correctness check."""
    h = jnp.maximum(x @ params["w1"] + params["b1"], 0.0)
    h = jnp.maximum(h @ params["w2"] + params["b2"], 0.0)
    h = jnp.maximum(h @ params["w3"] + params["b3"], 0.0)
    return h


if __name__ == "__main__":
    key = jax.random.PRNGKey(0)
    k_params, k_x1, k_x2 = jax.random.split(key, 3)

    n_features = 16
    params = init_params(k_params, n_features)

    # 1) Tiny batch (matches the module's typical usage), single grid step.
    batch = 8
    x_small = jax.random.normal(k_x1, (batch, n_features), jnp.float32)
    out = jax.block_until_ready(net_forward(x_small, params))
    ref = net_forward_ref(x_small, params)
    assert out.shape == (batch, 5), out.shape
    assert jnp.allclose(out, ref, atol=1e-5, rtol=1e-5), "small-batch mismatch vs reference"

    # 2) Non-divisible batch + explicit tile: grid = cdiv(300, 128) = 3 steps,
    #    exercising the padding path and the multi-step pipeline.
    batch2 = 300
    x_big = jax.random.normal(k_x2, (batch2, n_features), jnp.float32)
    out2 = jax.block_until_ready(net_forward(x_big, params, block_m=128))
    ref2 = net_forward_ref(x_big, params)
    assert out2.shape == (batch2, 5), out2.shape
    assert jnp.allclose(out2, ref2, atol=1e-5, rtol=1e-5), "tiled mismatch vs reference"

    # 3) Optional bf16-x path for the fc1 matmul (halves dominant HBM read traffic).
    out3 = jax.block_until_ready(net_forward(x_big, params, block_m=128, bf16_fc1=True))
    assert out3.shape == (batch2, 5), out3.shape
    assert jnp.allclose(out3, ref2, atol=1e-1, rtol=1e-1), "bf16 path mismatch vs reference"

    print("KERNEL_OK")
</pallas_src>

<mosaic_0001>
module attributes {stable_mosaic.version = 11 : i64} {
  func.func @mlp_kernel(%arg0: i32, %arg1: memref<8x16xf32, #tpu.memory_space<vmem>>, %arg2: memref<16x8xf32, #tpu.memory_space<vmem>>, %arg3: memref<8x5xf32, #tpu.memory_space<vmem>>, %arg4: memref<5x5xf32, #tpu.memory_space<vmem>>, %arg5: memref<1x18xf32, #tpu.memory_space<vmem>>, %arg6: memref<8x5xf32, #tpu.memory_space<vmem>>) attributes {dimension_semantics = [#tpu.dimension_semantics<parallel>], iteration_bounds = array<i64: 1>, scalar_prefetch = 0 : i64, scratch_operands = 0 : i64, tpu.core_type = #tpu.core_type<tc>, window_params = [{transform_indices = @transform_0, window_bounds = array<i64: 8, 16>}, {pipeline_mode = #tpu.pipeline_mode<synchronous>, transform_indices = @transform_1, window_bounds = array<i64: 16, 8>}, {pipeline_mode = #tpu.pipeline_mode<synchronous>, transform_indices = @transform_2, window_bounds = array<i64: 8, 5>}, {pipeline_mode = #tpu.pipeline_mode<synchronous>, transform_indices = @transform_3, window_bounds = array<i64: 5, 5>}, {pipeline_mode = #tpu.pipeline_mode<synchronous>, transform_indices = @transform_4, window_bounds = array<i64: 1, 18>}, {transform_indices = @transform_5, window_bounds = array<i64: 8, 5>}]} {
    %c0 = arith.constant 0 : index
    %c0_0 = arith.constant 0 : index
    %0 = vector.load %arg1[%c0, %c0_0] : memref<8x16xf32, #tpu.memory_space<vmem>>, vector<8x16xf32>
    %c0_1 = arith.constant 0 : index
    %c0_2 = arith.constant 0 : index
    %1 = vector.load %arg5[%c0_1, %c0_2] : memref<1x18xf32, #tpu.memory_space<vmem>>, vector<1x18xf32>
    %2 = vector.extract_strided_slice %1 {offsets = [0, 0], sizes = [1, 8], strides = [1, 1]} : vector<1x18xf32> to vector<1x8xf32>
    %3 = vector.extract_strided_slice %1 {offsets = [0, 8], sizes = [1, 5], strides = [1, 1]} : vector<1x18xf32> to vector<1x5xf32>
    %4 = vector.extract_strided_slice %1 {offsets = [0, 13], sizes = [1, 5], strides = [1, 1]} : vector<1x18xf32> to vector<1x5xf32>
    %c0_3 = arith.constant 0 : index
    %c0_4 = arith.constant 0 : index
    %5 = vector.load %arg2[%c0_3, %c0_4] : memref<16x8xf32, #tpu.memory_space<vmem>>, vector<16x8xf32>
    %cst = arith.constant dense<0.000000e+00> : vector<8x8xf32>
    %6 = tpu.matmul %0, %5, %cst {dimension_numbers = #tpu.dot_dimension_numbers<[1], [0], [0], [1], [0, 0, 1, 1], [], []>} : vector<8x16xf32>, vector<16x8xf32>, vector<8x8xf32> -> vector<8x8xf32>
    %7 = vector.broadcast %2 : vector<1x8xf32> to vector<8x8xf32>
    %8 = arith.addf %6, %7 : vector<8x8xf32>
    %cst_5 = arith.constant 0.000000e+00 : f32
    %9 = vector.broadcast %cst_5 : f32 to vector<8x8xf32>
    %10 = arith.maximumf %8, %9 : vector<8x8xf32>
    %c0_6 = arith.constant 0 : index
    %c0_7 = arith.constant 0 : index
    %11 = vector.load %arg3[%c0_6, %c0_7] : memref<8x5xf32, #tpu.memory_space<vmem>>, vector<8x5xf32>
    %cst_8 = arith.constant dense<0.000000e+00> : vector<8x5xf32>
    %12 = tpu.matmul %10, %11, %cst_8 {dimension_numbers = #tpu.dot_dimension_numbers<[1], [0], [0], [1], [0, 0, 1, 1], [], []>} : vector<8x8xf32>, vector<8x5xf32>, vector<8x5xf32> -> vector<8x5xf32>
    %13 = vector.broadcast %3 : vector<1x5xf32> to vector<8x5xf32>
    %14 = arith.addf %12, %13 : vector<8x5xf32>
    %cst_9 = arith.constant 0.000000e+00 : f32
    %15 = vector.broadcast %cst_9 : f32 to vector<8x5xf32>
    %16 = arith.maximumf %14, %15 : vector<8x5xf32>
    %c0_10 = arith.constant 0 : index
    %c0_11 = arith.constant 0 : index
    %17 = vector.load %arg4[%c0_10, %c0_11] : memref<5x5xf32, #tpu.memory_space<vmem>>, vector<5x5xf32>
    %cst_12 = arith.constant dense<0.000000e+00> : vector<8x5xf32>
    %18 = tpu.matmul %16, %17, %cst_12 {dimension_numbers = #tpu.dot_dimension_numbers<[1], [0], [0], [1], [0, 0, 1, 1], [], []>} : vector<8x5xf32>, vector<5x5xf32>, vector<8x5xf32> -> vector<8x5xf32>
    %19 = vector.broadcast %4 : vector<1x5xf32> to vector<8x5xf32>
    %20 = arith.addf %18, %19 : vector<8x5xf32>
    %cst_13 = arith.constant 0.000000e+00 : f32
    %21 = vector.broadcast %cst_13 : f32 to vector<8x5xf32>
    %22 = arith.maximumf %20, %21 : vector<8x5xf32>
    %c0_14 = arith.constant 0 : index
    %c0_15 = arith.constant 0 : index
    %23 = vector.load %arg6[%c0_14, %c0_15] : memref<8x5xf32, #tpu.memory_space<vmem>>, vector<8x5xf32>
    tpu.vector_store %arg6[%c0_14, %c0_15], %22 {strides = array<i32>} : memref<8x5xf32, #tpu.memory_space<vmem>>, vector<8x5xf32>,
    return
  }
  func.func @transform_0(%arg0: i32) -> (i32, i32) {
    %c0_i32 = arith.constant 0 : i32
    %c0_i32_0 = arith.constant 0 : i32
    return %arg0, %c0_i32 : i32, i32
  }
  func.func @transform_1(%arg0: i32) -> (i32, i32) {
    %c0_i32 = arith.constant 0 : i32
    %c0_i32_0 = arith.constant 0 : i32
    %c0_i32_1 = arith.constant 0 : i32
    return %c0_i32, %c0_i32_0 : i32, i32
  }
  func.func @transform_2(%arg0: i32) -> (i32, i32) {
    %c0_i32 = arith.constant 0 : i32
    %c0_i32_0 = arith.constant 0 : i32
    %c0_i32_1 = arith.constant 0 : i32
    return %c0_i32, %c0_i32_0 : i32, i32
  }
  func.func @transform_3(%arg0: i32) -> (i32, i32) {
    %c0_i32 = arith.constant 0 : i32
    %c0_i32_0 = arith.constant 0 : i32
    %c0_i32_1 = arith.constant 0 : i32
    return %c0_i32, %c0_i32_0 : i32, i32
  }
  func.func @transform_4(%arg0: i32) -> (i32, i32) {
    %c0_i32 = arith.constant 0 : i32
    %c0_i32_0 = arith.constant 0 : i32
    %c0_i32_1 = arith.constant 0 : i32
    return %c0_i32, %c0_i32_0 : i32, i32
  }
  func.func @transform_5(%arg0: i32) -> (i32, i32) {
    %c0_i32 = arith.constant 0 : i32
    %c0_i32_0 = arith.constant 0 : i32
    return %arg0, %c0_i32 : i32, i32
  }
}

</mosaic_0001>

<bundles_post_ra>
// kernel: tpu_custom_call.1
= control target key start
LH: loop header
LB: loop body
LE: loop exit
PB: predicated region body
PF: predicated region fallthrough
CT: control target
= control target key end

     0   :  { %v345_v2 = vmov 0.0|0.0   ;;  %vm346_vm0 = vmmov 0   ;;  %v347_v4 = vmov 0.0   ;;  %s414_s0 = inlined_call_operand.vmem [shape: f32[8,16], index: 0, kind: input, shape index: {}]   ;;  %s415_s1 = inlined_call_operand.vmem [shape: f32[16,8], index: 1, kind: input, shape index: {}]   ;;  %s416_s2 = inlined_call_operand.vmem [shape: f32[8,5], index: 2, kind: input, shape index: {}]   ;;  %s417_s3 = inlined_call_operand.vmem [shape: f32[5,5], index: 3, kind: input, shape index: {}]   ;;  %s418_s4 = inlined_call_operand.vmem [shape: f32[1,18], index: 4, kind: input, shape index: {}]   ;;  %s419_s5 = inlined_call_operand.hbm [shape: f32[8,5], index: 5, kind: output, shape index: {}]  }
   0x1   :  { %v23_v0 = vld [vmem:[%s415_s1] sm:$0xff]  ;;  %v24_v1 = vld [vmem:[%s415_s1 + $0x8] sm:$0xff]  ;;  %312 = vmatprep.subr.bf16.mxu0 %v345_v2  ;;  %299 = vmatprep.mubr.msk.f32.mxu0 %vm346_vm0, %v347_v4 }
   0x2   :  { %v313_v3 = vpack.c.bf16 %v24_v1, %v23_v0 }
   0x3   :  { %10 = vsyncpa [#allocation3], 0  ;;  %302 = vmatprep.subr.mxu1 %v347_v4  ;;  %304 = vmatprep.mubr.msk.f32.mxu1 %vm346_vm0, %v347_v4  ;;  %v21_v5 = vld [vmem:[%s414_s0] sm:$0xff]  ;;  %vm31_vm1 = vcmask 130048   ;;  %s348_s27 = smov 120   ;;  %vm110_vm2 = vcmask 64512  }
   0x4   :  { %314 = vmatpush3.bf16.msra.mxu0 %v313_v3  ;;  %v106_v6 = vld [vmem:[%s416_s2] sm:$0xff]  ;;  %vm193_vm3 = vcmask 1044480   ;;  %s349_s2 = smov 115   ;;  %vm189_vm4 = vcmask 39936  }
   0x5   :  { %303 = vmatpush3.msra.mxu1 %v106_v6  ;;  %v283_v7 = vld [vmem:[%s418_s4] ss:$0 sm:$0xff]  ;;  %s350_s4 = smov [#allocation2]  }
   0x6   :  { %307 = vmatprep.subr.mxu1 %v347_v4  ;;  %107 = vrot.lane.b32.xlu0 %v283_v7, %s348_s27  ;;  %v185_v12 = vld [vmem:[%s417_s3] sm:$0x1f]  ;;  %s275_s29 = sshll.u32 %s350_s4, 4  ;;  %s276_s29 = int_to_ptr.vmem [resolvable:$true] %s275_s29 }
   0x7   :  { %300 = vmatmul.mubr.msk.f32.vlgmr.msra.gmra.mrb[0].mxu0 %vm31_vm1, %v21_v5  ;;  %s321_s3 = scalar_lea.vmem %s276_s29, 128  ;;  %p326_p1 = scmp.lt.s32.totalorder %s276_s29, %s276_s29 }
   0x8   :  { %p322_p0 = scmp.ne.s32.totalorder %s276_s29, %s321_s3  ;;  %p327_p2 = scmp.lt.s32.totalorder %s321_s3, %s321_s3 }
   0xa   :  { %186 = vrot.lane.b32.xlu0 %v283_v7, %s349_s2  ;;  %p328_p3 = por %p327_p2, %p326_p1 }
   0xc   :  { %p329_p4 = pnand %p328_p3, %p322_p0 }
  0x78   :  { %v108_v13 = vpop.permute.xlu0 %107 }
  0x7c   :  { %v187_v18 = vpop.permute.xlu0 %186 }
  0xda   :  { %v101_v8 = vpop.f32.mrb[0].mxu0 }
  0xdb   :  { %v102_v9 = vadd.f32 %v283_v7, %v101_v8  ;;  %v301_v10 = vpop.f32.mrb[1].mxu0 }
  0xdd   :  { %v105_v11 = vmax.f32 %v102_v9, 0.0 }
  0xdf   :  { %305 = vmatmul.mubr.msk.f32.vlgmr.msra.gmra.mrb[0].mxu1 %vm110_vm2, %v105_v11 }
  0xe0   :  { %309 = vmatprep.mubr.msk.f32.mxu1 %vm346_vm0, %v347_v4  ;;  %308 = vmatpush3.msk.msra.mxu1 %vm193_vm3, %v185_v12 }
 0x1b2   :  { %v180_v14 = vpop.f32.mrb[0].mxu1 }
 0x1b3   :  { %v181_v15 = vadd.f32 %v180_v14, %v108_v13  ;;  %v306_v16 = vpop.f32.mrb[1].mxu1 }
 0x1b5   :  { %v184_v17 = vmax.f32 %v181_v15, 0.0 }
 0x1b7   :  { %310 = vmatmul.mubr.msk.f32.vlgmr.msra.gmra.mrb[2].mxu1 %vm189_vm4, %v184_v17 }
 0x28a   :  { %v263_v19 = vpop.f32.mrb[2].mxu1 }
 0x28b   :  { %v264_v20 = vadd.f32 %v263_v19, %v187_v18  ;;  %v311_v21 = vpop.f32.mrb[3].mxu1 }
 0x28d   :  { %v267_v22 = vmax.f32 %v264_v20, 0.0 }
 0x28f   :  { %268 = vst.msk [vmem:[#allocation2] sm:$0xff] %vm189_vm4, %v267_v22 }
 0x290   :  { %332 = shalt.err (!%p329_p4)
}
 0x291   :  { %s333_s7 = scalar_lea.hbm %s419_s5, 128 }
 0x292   :  { %p334_p5 = scmp.ne.s32.totalorder %s419_s5, %s333_s7  ;;  %p337_p6 = scmp.lt.u32.totalorder %s333_s7, %s419_s5 }
 0x294   :  { %p339_p7 = pnand %p337_p6, %p334_p5 }
 0x296   :  { %342 = shalt.err (!%p339_p7)
}
 0x297   :  { %278 = dma.vmem_to_hbm [thread:$0]  %s276_s29, 128, %s419_s5, [#allocation3]  }
 0x298   :  { %343 = dma.done.wait [#allocation3], 128  }
 0x299   :  { %344 = vsyncadd [#allocation3], 4294967168 }
 0x29a   :  { %282 = vsyncpa [#allocation3], 1 }

</bundles_post_ra>
